<compile_context>
chip_gen: v7x
topology: tpu7x:2x2x1
jax: 0.10.0
libtpu: 0.0.40
codegen_flags: <defaults>
</compile_context>

<pallas_src>
import functools

import jax
import jax.numpy as jnp
from jax.experimental import pallas as pl
from jax.experimental.pallas import tpu as pltpu

EPS = 1e-5
LANE = 128
SUBLANE = 8


def _round_up(x, m):
    return (x + m - 1) // m * m


def siamese_kernel(x1_ref, x2_ref, w1_ref, b1_ref, w2_ref, b2_ref,
                   w3_ref, b3_ref, o_ref, *, matmul_dtype):
    # squared difference (f32 on VPU), then cast for the MXU
    d = x1_ref[...] - x2_ref[...]
    x = (d * d).astype(matmul_dtype)

    # Linear c1 (BN1 folded) + ReLU  -- real K, Mosaic pads in VMEM
    h1 = jnp.dot(x, w1_ref[...], preferred_element_type=jnp.float32) + b1_ref[...]
    h1 = jnp.maximum(h1, 0.0)

    # Dropout2d(0.25): identity in eval mode (no-op)

    # Linear c2 (BN2 folded) + ReLU
    h2 = jnp.dot(h1.astype(matmul_dtype), w2_ref[...],
                 preferred_element_type=jnp.float32) + b2_ref[...]
    h2 = jnp.maximum(h2, 0.0)

    # Linear c3: output width 1 -> elementwise mul + cross-lane reduce (XLU),
    # keeps the output block narrow ((tb, 1)) instead of a padded 128-lane slab.
    z = jnp.sum(h2 * w3_ref[...], axis=-1, keepdims=True) + b3_ref[...]

    # exact sigmoid via tanh (single EUP op, stays in [0, 1])
    o_ref[...] = 0.5 * jnp.tanh(0.5 * z) + 0.5


@functools.partial(jax.jit, static_argnames=("block_b",))
def siamese_forward(input1, input2, params, *, block_b=1024):
    """input1/input2: (B, inputsize) f32.  Returns (B, 1) f32."""
    B, in_features = input1.shape
    w1, b1 = params["w1"], params["b1"]
    w2, b2 = params["w2"], params["b2"]
    w3, b3 = params["w3"], params["b3"]
    in_k, s1_p = w1.shape
    _, s2_p = w2.shape
    assert in_k == in_features
    matmul_dtype = w1.dtype

    # Batch tiling: pad B to a sublane multiple, tile at `block_b` rows.
    # If the grid would collapse to a single step, split it in two so both
    # TensorCores on v7x get work (grid axis is marked "parallel").
    b_pad = _round_up(max(B, SUBLANE), SUBLANE)
    tb = min(block_b, b_pad)
    if b_pad >= 2 * SUBLANE and tb >= b_pad:
        tb = _round_up(pl.cdiv(b_pad, 2), SUBLANE)
    b_pad = _round_up(b_pad, tb)

    def pad_batch(x):  # only the batch dim; feature dim streams at real width
        return x if b_pad == B else jnp.pad(x, ((0, b_pad - B), (0, 0)))

    x1p, x2p = pad_batch(input1), pad_batch(input2)

    batch_spec = lambda shape: pl.BlockSpec(shape, lambda i: (i, 0))
    const_spec = lambda shape: pl.BlockSpec(shape, lambda i: (0, 0))  # resident

    out_padded = pl.pallas_call(
        functools.partial(siamese_kernel, matmul_dtype=matmul_dtype),
        out_shape=jax.ShapeDtypeStruct((b_pad, 1), jnp.float32),
        grid=(b_pad // tb,),
        in_specs=[
            batch_spec((tb, in_features)),   # input1 tile (full-extent last dim)
            batch_spec((tb, in_features)),   # input2 tile
            const_spec((in_features, s1_p)),  # W1 (BN1 folded), real K
            const_spec((1, s1_p)),            # b1 (BN1 folded)
            const_spec((s1_p, s2_p)),         # W2 (BN2 folded)
            const_spec((1, s2_p)),            # b2 (BN2 folded)
            const_spec((1, s2_p)),            # W3 as a row vector
            const_spec((1, 1)),               # b3
        ],
        out_specs=batch_spec((tb, 1)),
        compiler_params=pltpu.CompilerParams(
            dimension_semantics=("parallel",),  # shard batch across TCs on v7x
        ),
    )(x1p, x2p, w1, b1, w2, b2, w3, b3)

    return out_padded[:B, :]


def fold_and_pad_params(w1, b1, bn1, w2, b2, bn2, w3, b3, *,
                        matmul_dtype=jnp.bfloat16):
    """Fold eval-mode BatchNorm into the preceding Linear, transpose weights to
    (in, out), and zero-pad hidden dims to a multiple of 128 lanes.  The input
    feature dim (K of W1) and the output dim are left at their real sizes."""

    def fold(w_t, b, bn):
        scale = bn["gamma"] * jax.lax.rsqrt(bn["var"] + EPS)      # (out,)
        return w_t * scale[None, :], (b - bn["mean"]) * scale + bn["beta"]

    w1f, b1f = fold(w1.T, b1, bn1)          # (inputsize, size1), (size1,)
    w2f, b2f = fold(w2.T, b2, bn2)          # (size1, size2),     (size2,)

    inputsize, size1 = w1f.shape
    _, size2 = w2f.shape
    s1_p, s2_p = (_round_up(n, LANE) for n in (size1, size2))

    def pad_w(w, r, c):
        return jnp.zeros((r, c), jnp.float32).at[:w.shape[0], :w.shape[1]].set(w)

    def pad_b(b, c):  # 1-D -> (1, c) row, broadcasts over batch
        return jnp.zeros((1, c), jnp.float32).at[0, :b.shape[0]].set(b)

    return {
        "w1": pad_w(w1f, inputsize, s1_p).astype(matmul_dtype),
        "b1": pad_b(b1f, s1_p),
        "w2": pad_w(w2f, s1_p, s2_p).astype(matmul_dtype),
        "b2": pad_b(b2f, s2_p),
        # final layer kept f32: (1, s2_p) row vector for the in-kernel reduce
        "w3": pad_b(w3.T[:, 0], s2_p),
        "b3": jnp.asarray(b3, jnp.float32).reshape(1, 1),
    }


def init_params(key, inputsize, size1, size2, *, matmul_dtype=jnp.bfloat16):
    """PyTorch-style init (Linear weight shape (out, in)), then fold + pad."""
    ks = jax.random.split(key, 6)

    def lin(kw, kb, fan_in, fan_out):
        bound = 1.0 / jnp.sqrt(fan_in)
        w = jax.random.uniform(kw, (fan_out, fan_in), jnp.float32, -bound, bound)
        b = jax.random.uniform(kb, (fan_out,), jnp.float32, -bound, bound)
        return w, b

    w1, b1 = lin(ks[0], ks[1], inputsize, size1)
    w2, b2 = lin(ks[2], ks[3], size1, size2)
    w3, b3 = lin(ks[4], ks[5], size2, 1)

    # BatchNorm1d defaults: gamma=1, beta=0, running_mean=0, running_var=1
    bn1 = dict(gamma=jnp.ones(size1), beta=jnp.zeros(size1),
               mean=jnp.zeros(size1), var=jnp.ones(size1))
    bn2 = dict(gamma=jnp.ones(size2), beta=jnp.zeros(size2),
               mean=jnp.zeros(size2), var=jnp.ones(size2))

    return fold_and_pad_params(w1, b1, bn1, w2, b2, bn2, w3, b3,
                               matmul_dtype=matmul_dtype)


if __name__ == "__main__":
    key = jax.random.PRNGKey(0)
    k_p, k_x1, k_x2 = jax.random.split(key, 3)

    # small shapes consistent with the module
    B, inputsize, size1, size2 = 8, 32, 64, 32

    params = init_params(k_p, inputsize, size1, size2, matmul_dtype=jnp.bfloat16)
    input1 = jax.random.normal(k_x1, (B, inputsize), jnp.float32)
    input2 = jax.random.normal(k_x2, (B, inputsize), jnp.float32)

    out = jax.block_until_ready(siamese_forward(input1, input2, params))

    assert out.shape == (B, 1)
    assert bool(jnp.all(jnp.isfinite(out)))
    assert bool(jnp.all((out >= 0.0) & (out <= 1.0)))
    print("KERNEL_OK")
</pallas_src>

<mosaic_0001>
module attributes {stable_mosaic.version = 11 : i64} {
  func.func @siamese_kernel(%arg0: i32, %arg1: memref<8x32xf32, #tpu.memory_space<vmem>>, %arg2: memref<8x32xf32, #tpu.memory_space<vmem>>, %arg3: memref<32x128xbf16, #tpu.memory_space<vmem>>, %arg4: memref<1x128xf32, #tpu.memory_space<vmem>>, %arg5: memref<128x128xbf16, #tpu.memory_space<vmem>>, %arg6: memref<1x128xf32, #tpu.memory_space<vmem>>, %arg7: memref<1x128xf32, #tpu.memory_space<vmem>>, %arg8: memref<1x1xf32, #tpu.memory_space<vmem>>, %arg9: memref<8x1xf32, #tpu.memory_space<vmem>>) attributes {dimension_semantics = [#tpu.dimension_semantics<parallel>], iteration_bounds = array<i64: 1>, scalar_prefetch = 0 : i64, scratch_operands = 0 : i64, tpu.core_type = #tpu.core_type<tc>, window_params = [{transform_indices = @transform_0, window_bounds = array<i64: 8, 32>}, {transform_indices = @transform_1, window_bounds = array<i64: 8, 32>}, {pipeline_mode = #tpu.pipeline_mode<synchronous>, transform_indices = @transform_2, window_bounds = array<i64: 32, 128>}, {pipeline_mode = #tpu.pipeline_mode<synchronous>, transform_indices = @transform_3, window_bounds = array<i64: 1, 128>}, {pipeline_mode = #tpu.pipeline_mode<synchronous>, transform_indices = @transform_4, window_bounds = array<i64: 128, 128>}, {pipeline_mode = #tpu.pipeline_mode<synchronous>, transform_indices = @transform_5, window_bounds = array<i64: 1, 128>}, {pipeline_mode = #tpu.pipeline_mode<synchronous>, transform_indices = @transform_6, window_bounds = array<i64: 1, 128>}, {pipeline_mode = #tpu.pipeline_mode<synchronous>, transform_indices = @transform_7, window_bounds = array<i64: 1, 1>}, {transform_indices = @transform_8, window_bounds = array<i64: 8, 1>}]} {
    %c0 = arith.constant 0 : index
    %c0_0 = arith.constant 0 : index
    %0 = vector.load %arg1[%c0, %c0_0] : memref<8x32xf32, #tpu.memory_space<vmem>>, vector<8x32xf32>
    %c0_1 = arith.constant 0 : index
    %c0_2 = arith.constant 0 : index
    %1 = vector.load %arg2[%c0_1, %c0_2] : memref<8x32xf32, #tpu.memory_space<vmem>>, vector<8x32xf32>
    %2 = arith.subf %0, %1 : vector<8x32xf32>
    %3 = arith.mulf %2, %2 : vector<8x32xf32>
    %4 = arith.truncf %3 : vector<8x32xf32> to vector<8x32xbf16>
    %c0_3 = arith.constant 0 : index
    %c0_4 = arith.constant 0 : index
    %5 = vector.load %arg3[%c0_3, %c0_4] : memref<32x128xbf16, #tpu.memory_space<vmem>>, vector<32x128xbf16>
    %cst = arith.constant dense<0.000000e+00> : vector<8x128xf32>
    %6 = tpu.matmul %4, %5, %cst {dimension_numbers = #tpu.dot_dimension_numbers<[1], [0], [0], [1], [0, 0, 1, 1], [], []>} : vector<8x32xbf16>, vector<32x128xbf16>, vector<8x128xf32> -> vector<8x128xf32>
    %c0_5 = arith.constant 0 : index
    %c0_6 = arith.constant 0 : index
    %7 = vector.load %arg4[%c0_5, %c0_6] : memref<1x128xf32, #tpu.memory_space<vmem>>, vector<1x128xf32>
    %8 = vector.broadcast %7 : vector<1x128xf32> to vector<8x128xf32>
    %9 = arith.addf %6, %8 : vector<8x128xf32>
    %cst_7 = arith.constant 0.000000e+00 : f32
    %10 = vector.broadcast %cst_7 : f32 to vector<8x128xf32>
    %11 = arith.maximumf %9, %10 : vector<8x128xf32>
    %12 = arith.truncf %11 : vector<8x128xf32> to vector<8x128xbf16>
    %c0_8 = arith.constant 0 : index
    %c0_9 = arith.constant 0 : index
    %13 = vector.load %arg5[%c0_8, %c0_9] : memref<128x128xbf16, #tpu.memory_space<vmem>>, vector<128x128xbf16>
    %cst_10 = arith.constant dense<0.000000e+00> : vector<8x128xf32>
    %14 = tpu.matmul %12, %13, %cst_10 {dimension_numbers = #tpu.dot_dimension_numbers<[1], [0], [0], [1], [0, 0, 1, 1], [], []>} : vector<8x128xbf16>, vector<128x128xbf16>, vector<8x128xf32> -> vector<8x128xf32>
    %c0_11 = arith.constant 0 : index
    %c0_12 = arith.constant 0 : index
    %15 = vector.load %arg6[%c0_11, %c0_12] : memref<1x128xf32, #tpu.memory_space<vmem>>, vector<1x128xf32>
    %16 = vector.broadcast %15 : vector<1x128xf32> to vector<8x128xf32>
    %17 = arith.addf %14, %16 : vector<8x128xf32>
    %cst_13 = arith.constant 0.000000e+00 : f32
    %18 = vector.broadcast %cst_13 : f32 to vector<8x128xf32>
    %19 = arith.maximumf %17, %18 : vector<8x128xf32>
    %c0_14 = arith.constant 0 : index
    %c0_15 = arith.constant 0 : index
    %20 = vector.load %arg7[%c0_14, %c0_15] : memref<1x128xf32, #tpu.memory_space<vmem>>, vector<1x128xf32>
    %21 = vector.broadcast %20 : vector<1x128xf32> to vector<8x128xf32>
    %22 = arith.mulf %19, %21 : vector<8x128xf32>
    %cst_16 = arith.constant dense<0.000000e+00> : vector<8xf32>
    %23 = vector.multi_reduction <add>, %22, %cst_16 [1] : vector<8x128xf32> to vector<8xf32>
    %24 = vector.shape_cast %23 : vector<8xf32> to vector<8x1xf32>
    %c0_17 = arith.constant 0 : index
    %c0_18 = arith.constant 0 : index
    %25 = vector.load %arg8[%c0_17, %c0_18] : memref<1x1xf32, #tpu.memory_space<vmem>>, vector<1x1xf32>
    %26 = vector.broadcast %25 : vector<1x1xf32> to vector<8x1xf32>
    %27 = arith.addf %24, %26 : vector<8x1xf32>
    %cst_19 = arith.constant 5.000000e-01 : f32
    %28 = vector.broadcast %cst_19 : f32 to vector<8x1xf32>
    %29 = arith.mulf %28, %27 : vector<8x1xf32>
    %30 = math.tanh %29 : vector<8x1xf32>
    %cst_20 = arith.constant 5.000000e-01 : f32
    %31 = vector.broadcast %cst_20 : f32 to vector<8x1xf32>
    %32 = arith.mulf %31, %30 : vector<8x1xf32>
    %cst_21 = arith.constant 5.000000e-01 : f32
    %33 = vector.broadcast %cst_21 : f32 to vector<8x1xf32>
    %34 = arith.addf %32, %33 : vector<8x1xf32>
    %c0_22 = arith.constant 0 : index
    %c0_23 = arith.constant 0 : index
    %35 = vector.load %arg9[%c0_22, %c0_23] : memref<8x1xf32, #tpu.memory_space<vmem>>, vector<8x1xf32>
    tpu.vector_store %arg9[%c0_22, %c0_23], %34 {strides = array<i32>} : memref<8x1xf32, #tpu.memory_space<vmem>>, vector<8x1xf32>,
    return
  }
  func.func @transform_0(%arg0: i32) -> (i32, i32) {
    %c0_i32 = arith.constant 0 : i32
    %c0_i32_0 = arith.constant 0 : i32
    return %arg0, %c0_i32 : i32, i32
  }
  func.func @transform_1(%arg0: i32) -> (i32, i32) {
    %c0_i32 = arith.constant 0 : i32
    %c0_i32_0 = arith.constant 0 : i32
    return %arg0, %c0_i32 : i32, i32
  }
  func.func @transform_2(%arg0: i32) -> (i32, i32) {
    %c0_i32 = arith.constant 0 : i32
    %c0_i32_0 = arith.constant 0 : i32
    %c0_i32_1 = arith.constant 0 : i32
    return %c0_i32, %c0_i32_0 : i32, i32
  }
  func.func @transform_3(%arg0: i32) -> (i32, i32) {
    %c0_i32 = arith.constant 0 : i32
    %c0_i32_0 = arith.constant 0 : i32
    %c0_i32_1 = arith.constant 0 : i32
    return %c0_i32, %c0_i32_0 : i32, i32
  }
  func.func @transform_4(%arg0: i32) -> (i32, i32) {
    %c0_i32 = arith.constant 0 : i32
    %c0_i32_0 = arith.constant 0 : i32
    %c0_i32_1 = arith.constant 0 : i32
    return %c0_i32, %c0_i32_0 : i32, i32
  }
  func.func @transform_5(%arg0: i32) -> (i32, i32) {
    %c0_i32 = arith.constant 0 : i32
    %c0_i32_0 = arith.constant 0 : i32
    %c0_i32_1 = arith.constant 0 : i32
    return %c0_i32, %c0_i32_0 : i32, i32
  }
  func.func @transform_6(%arg0: i32) -> (i32, i32) {
    %c0_i32 = arith.constant 0 : i32
    %c0_i32_0 = arith.constant 0 : i32
    %c0_i32_1 = arith.constant 0 : i32
    return %c0_i32, %c0_i32_0 : i32, i32
  }
  func.func @transform_7(%arg0: i32) -> (i32, i32) {
    %c0_i32 = arith.constant 0 : i32
    %c0_i32_0 = arith.constant 0 : i32
    %c0_i32_1 = arith.constant 0 : i32
    return %c0_i32, %c0_i32_0 : i32, i32
  }
  func.func @transform_8(%arg0: i32) -> (i32, i32) {
    %c0_i32 = arith.constant 0 : i32
    %c0_i32_0 = arith.constant 0 : i32
    return %arg0, %c0_i32 : i32, i32
  }
}

</mosaic_0001>

<bundles_post_ra>
// kernel: siamese_forward.1
= control target key start
LH: loop header
LB: loop body
LE: loop exit
PB: predicated region body
PF: predicated region fallthrough
CT: control target
= control target key end

     0   :  { %s538_s0 = inlined_call_operand.hbm [shape: f32[8,32], index: 0, kind: input, shape index: {}]   ;;  %s539_s1 = inlined_call_operand.hbm [shape: f32[8,32], index: 1, kind: input, shape index: {}]   ;;  %s540_s2 = inlined_call_operand.vmem [shape: bf16[32,128], index: 2, kind: input, shape index: {}]   ;;  %s541_s3 = inlined_call_operand.vmem [shape: f32[1,128], index: 3, kind: input, shape index: {}]   ;;  %s542_s4 = inlined_call_operand.hbm [shape: bf16[128,128], index: 4, kind: input, shape index: {}]   ;;  %s543_s5 = inlined_call_operand.vmem [shape: f32[1,128], index: 5, kind: input, shape index: {}]   ;;  %s544_s6 = inlined_call_operand.vmem [shape: f32[1,128], index: 6, kind: input, shape index: {}]   ;;  %s545_s7 = inlined_call_operand.<no memory space> [shape: f32[1,1], index: 7, kind: input, shape index: {}]   ;;  %s546_s8 = inlined_call_operand.vmem [shape: f32[8,1], index: 8, kind: output, shape index: {}]  }
   0x1   :  { %v13_v0 = vstv %s545_s7 }
   0x2   :  { %14 = vst [vmem:[#allocation2] sm:$0x1] %v13_v0 }
   0x3   :  { %15 = vsyncpa [#allocation4], 0 }
   0x4   :  { %16 = vsyncpa [#allocation6], 0  ;;  %s429_s29 = smov [#allocation5]   ;;  %s430_s9 = smov [#allocation3]  }
   0x5   :  { %s33_s30 = sshll.u32 %s429_s29, 4  ;;  %s23_s10 = sshll.u32 %s430_s9, 4  ;;  %s34_s30 = int_to_ptr.vmem [resolvable:$true] %s33_s30  ;;  %s24_s10 = int_to_ptr.vmem [resolvable:$true] %s23_s10 }
   0x6   :  { %s359_s13 = scalar_lea.hbm %s539_s1, 128 }
   0x7   :  { %p360_p0 = scmp.ne.s32.totalorder %s539_s1, %s359_s13  ;;  %p363_p1 = scmp.lt.u32.totalorder %s359_s13, %s539_s1 }
   0x9   :  { %p365_p2 = pnand %p363_p1, %p360_p0 }
   0xb   :  { %368 = shalt.err (!%p365_p2)
}
   0xc   :  { %s369_s7 = scalar_lea.vmem %s34_s30, 128  ;;  %p374_p4 = scmp.lt.s32.totalorder %s34_s30, %s34_s30 }
   0xd   :  { %p370_p3 = scmp.ne.s32.totalorder %s34_s30, %s369_s7  ;;  %p375_p5 = scmp.lt.s32.totalorder %s369_s7, %s369_s7 }
   0xf   :  { %p376_p6 = por %p375_p5, %p374_p4 }
  0x11   :  { %p377_p7 = pnand %p376_p6, %p370_p3 }
  0x13   :  { %380 = shalt.err (!%p377_p7)
}
  0x14   :  { %36 = dma.hbm_to_vmem [thread:$0]  %s539_s1, 128, %s34_s30, [#allocation6]  }
  0x15   :  { %s381_s22 = scalar_lea.hbm %s538_s0, 128 }
  0x16   :  { %p382_p8 = scmp.ne.s32.totalorder %s538_s0, %s381_s22  ;;  %p385_p9 = scmp.lt.u32.totalorder %s381_s22, %s538_s0 }
  0x18   :  { %p387_p10 = pnand %p385_p9, %p382_p8 }
  0x1a   :  { %390 = shalt.err (!%p387_p10)
}
  0x1b   :  { %s391_s27 = scalar_lea.vmem %s24_s10, 128  ;;  %p396_p12 = scmp.lt.s32.totalorder %s24_s10, %s24_s10 }
  0x1c   :  { %p392_p11 = scmp.ne.s32.totalorder %s24_s10, %s391_s27  ;;  %p397_p13 = scmp.lt.s32.totalorder %s391_s27, %s391_s27 }
  0x1e   :  { %p398_p0 = por %p397_p13, %p396_p12 }
  0x20   :  { %p399_p1 = pnand %p398_p0, %p392_p11 }
  0x22   :  { %402 = shalt.err (!%p399_p1)
}
  0x23   :  { %26 = dma.hbm_to_vmem [thread:$0]  %s538_s0, 128, %s24_s10, [#allocation4]  }
  0x24   :  { %s431_s29 = smov [#allocation7]   ;;  %s403_s12 = scalar_lea.hbm %s542_s4, 1024 }
  0x25   :  { %s46_s30 = sshll.u32 %s431_s29, 4  ;;  %p404_p2 = scmp.ne.s32.totalorder %s542_s4, %s403_s12  ;;  %s47_s30 = int_to_ptr.vmem [resolvable:$true] %s46_s30 }
  0x26   :  { %p407_p3 = scmp.lt.u32.totalorder %s403_s12, %s542_s4 }
  0x28   :  { %p409_p4 = pnand %p407_p3, %p404_p2 }
  0x2a   :  { %412 = shalt.err (!%p409_p4)
}
  0x2b   :  { %s413_s17 = scalar_lea.vmem %s47_s30, 1024  ;;  %p418_p6 = scmp.lt.s32.totalorder %s47_s30, %s47_s30 }
  0x2c   :  { %p414_p5 = scmp.ne.s32.totalorder %s47_s30, %s413_s17  ;;  %p419_p7 = scmp.lt.s32.totalorder %s413_s17, %s413_s17 }
  0x2e   :  { %p420_p8 = por %p419_p7, %p418_p6 }
  0x30   :  { %p421_p9 = pnand %p420_p8, %p414_p5 }
  0x32   :  { %424 = shalt.err (!%p421_p9)
}
  0x33   :  { %s432_s0 = smov 64   ;;  %s433_s10 = smov 4  }
  0x34   :  { %52 = dma.hbm_to_vmem [thread:$0]  %s542_s4, 1024, %s47_s30, [#allocation6], %s432_s0, %s432_s0, %s433_s10  }
  0x35   :  { %425 = dma.done.wait [#allocation4], 128  }
  0x36   :  { %426 = vsyncadd [#allocation4], 4294967168 }
  0x37   :  { %427 = dma.done.wait [#allocation6], 1152  }
  0x38   :  { %428 = vsyncadd [#allocation6], 4294966144  ;;  %v434_v1 = vmov 0.0   ;;  %vm435_vm0 = vmmov 0   ;;  %v347_v2 = vld [vmem:[%s540_s2] sm:$0xff]   ;;  %v348_v3 = vld [vmem:[%s540_s2 + $0x8] sm:$0xff]  }
  0x39   :  { %312 = vmatprep.subr.bf16.mxu0 %v434_v1  ;;  %316 = vmatprep.mubr.msk.bf16.mxu0 %vm435_vm0, %v434_v1  ;;  %v69_v4 = vld [vmem:[#allocation3] sm:$0xff]  ;;  %v70_v5 = vld [vmem:[#allocation5] sm:$0xff]  ;;  %v349_v7 = vld [vmem:[#allocation7] sm:$0xff]   ;;  %vm97_vm1 = vcmask 261120   ;;  %vm277_vm2 = vcmask 7168  }
  0x3a   :  { %320 = vmatprep.subr.bf16.mxu1 %v434_v1  ;;  %336 = vmatprep.mubr.msk.bf16.mxu1 %vm435_vm0, %v434_v1  ;;  %v71_v6 = vsub.f32 %v69_v4, %v70_v5  ;;  %v350_v9 = vld [vmem:[#allocation7 + $0x8] sm:$0xff]   ;;  %v351_v11 = vld [vmem:[#allocation7 + $0x10] sm:$0xff]   ;;  %v352_v12 = vld [vmem:[#allocation7 + $0x18] sm:$0xff]  }
  0x3b   :  { %313 = vmatpush3.bf16.msra.mxu0 %v347_v2  ;;  %321 = vmatpush3.bf16.msra.mxu1 %v349_v7  ;;  %v353_v13 = vld [vmem:[#allocation7 + $0x20] sm:$0xff]   ;;  %v354_v14 = vld [vmem:[#allocation7 + $0x28] sm:$0xff]   ;;  %v355_v15 = vld [vmem:[#allocation7 + $0x30] sm:$0xff]  }
  0x3c   :  { %314 = vmatprep.subr.bf16.mxu0 %v434_v1  ;;  %v72_v8 = vmul.f32 %v71_v6, %v71_v6  ;;  %322 = vmatprep.subr.bf16.mxu1 %v434_v1  ;;  %v356_v16 = vld [vmem:[#allocation7 + $0x38] sm:$0xff]   ;;  %v285_v17 = vld [vmem:[%s541_s3] ss:$0 sm:$0xff] }
  0x3d   :  { %v289_v25 = vld [vmem:[%s543_s5] ss:$0 sm:$0xff] }
  0x3e   :  { %v73_v10 = vpack.c.bf16 %v72_v8, %v72_v8  ;;  %v298_v30 = vld [vmem:[%s544_s6] ss:$0 sm:$0xff] }
  0x3f   :  { %315 = vmatpush3.bf16.msra.mxu0 %v348_v3  ;;  %323 = vmatpush3.bf16.msra.mxu1 %v350_v9  ;;  %v299_v34 = vld [vmem:[#allocation2] ss:$0 sm:$0xff] }
  0x40   :  { %324 = vmatprep.subr.bf16.mxu1 %v434_v1 }
  0x42   :  { %317 = vmatmul.mubr.msk.bf16.vlgmr.msra.gmra.mrb[0].mxu0 %vm97_vm1, %v73_v10 }
  0x43   :  { %325 = vmatpush3.bf16.msra.mxu1 %v351_v11 }
  0x44   :  { %326 = vmatprep.subr.bf16.mxu1 %v434_v1 }
  0x47   :  { %327 = vmatpush3.bf16.msra.mxu1 %v352_v12 }
  0x48   :  { %328 = vmatprep.subr.bf16.mxu1 %v434_v1 }
  0x4b   :  { %329 = vmatpush3.bf16.msra.mxu1 %v353_v13 }
  0x4c   :  { %330 = vmatprep.subr.bf16.mxu1 %v434_v1 }
  0x4f   :  { %331 = vmatpush3.bf16.msra.mxu1 %v354_v14 }
  0x50   :  { %332 = vmatprep.subr.bf16.mxu1 %v434_v1 }
  0x53   :  { %333 = vmatpush3.bf16.msra.mxu1 %v355_v15 }
  0x54   :  { %334 = vmatprep.subr.bf16.mxu1 %v434_v1 }
  0x57   :  { %335 = vmatpush3.bf16.msra.mxu1 %v356_v16 }
 0x115   :  { %v135_v18 = vpop.f32.mrb[0].mxu0 }
 0x116   :  { %v136_v19 = vadd.f32 %v285_v17, %v135_v18  ;;  %v318_v20 = vpop.f32.mrb[1].mxu0 }
 0x117   :  { %v138_v21 = vpop.f32.mrb[2].mxu0 }
 0x118   :  { %v141_v22 = vmax.f32 %v136_v19, 0.0  ;;  %v319_v23 = vpop.f32.mrb[3].mxu0 }
 0x11a   :  { %v142_v24 = vpack.c.bf16 %v141_v22, %v141_v22 }
 0x11c   :  { %337 = vmatmul.mubr.bf16.vlgmr.msra.gmra.mrb[0].mxu1 %v142_v24 }
 0x1ef   :  { %v248_v26 = vpop.f32.mrb[0].mxu1 }
 0x1f0   :  { %v249_v27 = vadd.f32 %v289_v25, %v248_v26  ;;  %v338_v28 = vpop.f32.mrb[1].mxu1 }
 0x1f1   :  { %v251_v29 = vpop.f32.mrb[2].mxu1 }
 0x1f2   :  { %v254_v31 = vmax.f32 %v249_v27, 0.0  ;;  %v339_v32 = vpop.f32.mrb[3].mxu1 }
 0x1f4   :  { %v262_v33 = vmul.f32 %v298_v30, %v254_v31 }
 0x1f6   :  { %263 = vadd.xlane.f32.xlu0 %v262_v33 }
 0x283   :  { %v264_v35 = vpop.xlane.xlu0 %263 }
 0x284   :  { %v272_v36 = vadd.f32 %v299_v34, %v264_v35 }
 0x286   :  { %v273_v37 = vmul.f32 0.5, %v272_v36 }
 0x288   :  { %357 = vtanh.f32 %v273_v37 }
 0x292   :  { %v358_v38 = vpop.eup %357 }
 0x293   :  { %v275_v39 = vmul.f32 0.5, %v358_v38 }
 0x295   :  { %v276_v40 = vadd.f32 0.5, %v275_v39 }
 0x297   :  { %278 = vst.msk [vmem:[%s546_s8] sm:$0xff] %vm277_vm2, %v276_v40 }
 0x298   :  { %283 = vsyncpa [#allocation4], 1 }
 0x299   :  { %284 = vsyncpa [#allocation6], 1 }

</bundles_post_ra>
